<compile_context>
chip_gen: v5e
topology: v5e:2x2
jax: 0.10.0
libtpu: 0.0.40
codegen_flags: <defaults>
</compile_context>

<pallas_src>
import jax
import jax.numpy as jnp
from jax.experimental import pallas as pl
from jax.experimental.pallas import tpu as pltpu

NEG_SLOPE = 0.01   # nn.LeakyReLU default
LN_EPS = 1e-5      # nn.LayerNorm default
LANE = 128         # TPU lane width
SUBLANE = 8        # f32 sublane count


def _round_up(n, m):
    return ((n + m - 1) // m) * m


def _layernorm_centered(hc, gamma, beta):
    # hc already has zero mean along the feature axis (the Linear's weight columns and
    # bias were pre-centered in the wrapper), so this IS the two-pass LayerNorm:
    # one lane reduce (variance) per layer, gamma folded into the normalization scale.
    var = jnp.mean(hc * hc, axis=-1, keepdims=True)
    inv = jax.lax.rsqrt(var + LN_EPS)
    return hc * (inv * gamma) + beta


def _leaky_relu(h):
    return jnp.where(h > 0, h, NEG_SLOPE * h)


def dqnet_kernel(x_ref,
                 w1_ref, b1_ref, g1_ref, bt1_ref,
                 w2_ref, b2_ref, g2_ref, bt2_ref,
                 w3_ref, b3_ref,
                 o_ref):
    # x arrives f32 straight from HBM; cast to bf16 in-kernel for the MXU.
    x = x_ref[...].astype(jnp.bfloat16)                               # (TB, in_dim)

    # Linear(input -> H1): bf16 MXU operands, f32 accumulation.  Columns of w1/b1 are
    # pre-centered, so h is already mean-subtracted for the LayerNorm.
    h = jnp.dot(x, w1_ref[...], preferred_element_type=jnp.float32) + b1_ref[...]
    h = _leaky_relu(_layernorm_centered(h, g1_ref[...], bt1_ref[...]))   # f32 elementwise

    # Linear(H1 -> H2), same pre-centered trick.
    h = jnp.dot(h.astype(jnp.bfloat16), w2_ref[...],
                preferred_element_type=jnp.float32) + b2_ref[...]
    h = _leaky_relu(_layernorm_centered(h, g2_ref[...], bt2_ref[...]))

    # Linear(H2 -> OUT_PAD): 128-wide lane-dense store, bf16 writeback.
    o_ref[...] = (jnp.dot(h.astype(jnp.bfloat16), w3_ref[...],
                          preferred_element_type=jnp.float32)
                  + b3_ref[...]).astype(o_ref.dtype)


def deep_q_net_forward(x, params, *, tile_batch=512):
    """x: (batch, input_dim) f32. params: dict from init_params. Returns (batch, out_dim) f32."""
    batch, in_dim = x.shape
    h1 = params["w1"].shape[1]
    h2, out_pad = params["w3"].shape
    out_dim = params["out_dim"]

    # Batch tile: multiple of the f32 sublane, capped at tile_batch (sweep 512/1024/2048).
    rb = _round_up(batch, SUBLANE)
    tb = min(tile_batch, rb)
    if rb >= 2 * SUBLANE:
        # v7x has 2 TensorCores/chip: guarantee >= 2 grid steps so the "parallel"
        # batch axis actually shards across both cores (neutral on v5e/v6e).
        tb = min(tb, _round_up(pl.cdiv(rb, 2), SUBLANE))
    batch_pad = _round_up(batch, tb)

    # Only a (cheap, f32, rows-only) pad when batch doesn't divide the tile; no dtype
    # change and no column padding -> no extra full HBM copy of x in the common case.
    if batch_pad != batch:
        x = jnp.pad(x, ((0, batch_pad - batch), (0, 0)))

    grid = (batch_pad // tb,)

    def tiled(shape):
        return pl.BlockSpec(shape, lambda i: (i, 0))

    def resident(shape):
        # Constant block index -> stays VMEM-resident, no re-DMA across grid steps.
        return pl.BlockSpec(shape, lambda i: (0, 0))

    in_specs = [
        tiled((tb, in_dim)),      # x (f32; last dim == full array dim, so (8,128) rule ok)
        resident((in_dim, h1)),   # w1 (bf16, column-centered)
        resident((1, h1)),        # b1 (f32, centered)
        resident((1, h1)),        # g1
        resident((1, h1)),        # bt1
        resident((h1, h2)),       # w2 (bf16, column-centered)
        resident((1, h2)),        # b2 (f32, centered)
        resident((1, h2)),        # g2
        resident((1, h2)),        # bt2
        resident((h2, out_pad)),  # w3 (bf16)
        resident((1, out_pad)),   # b3
    ]

    flops = 2 * batch_pad * (in_dim * h1 + h1 * h2 + h2 * out_pad)
    bytes_accessed = (batch_pad * in_dim * 4                           # x (f32)
                      + batch_pad * out_pad * 2                        # out (bf16)
                      + (in_dim * h1 + h1 * h2 + h2 * out_pad) * 2     # weights (bf16)
                      + (3 * h1 + 3 * h2 + out_pad) * 4)               # biases / LN (f32)
    cost = pl.CostEstimate(flops=flops,
                           transcendentals=2 * batch_pad,              # 2 rsqrt per row
                           bytes_accessed=bytes_accessed)

    out = pl.pallas_call(
        dqnet_kernel,
        out_shape=jax.ShapeDtypeStruct((batch_pad, out_pad), jnp.bfloat16),
        grid=grid,
        in_specs=in_specs,
        out_specs=tiled((tb, out_pad)),
        compiler_params=pltpu.CompilerParams(
            dimension_semantics=("parallel",),          # batch tiles across v7x megacore
            vmem_limit_bytes=32 * 1024 * 1024,
        ),
        cost_estimate=cost,
    )(x,
      params["w1"], params["b1"], params["g1"], params["bt1"],
      params["w2"], params["b2"], params["g2"], params["bt2"],
      params["w3"], params["b3"])

    return out[:batch, :out_dim].astype(jnp.float32)


def init_params(key, input_dim, output_dim, hidden_layer_sizes=(256, 128)):
    """PyTorch-default init: Linear U(-1/sqrt(fan_in), +), LayerNorm gamma=1 / beta=0.

    Weights stored (in, out).  Layers followed by LayerNorm (w1/b1, w2/b2) have their
    output columns mean-centered so the matmul emits h - mean(h) directly (exact
    reparameterization of LayerNorm).  w3/b3 are zero-padded to 128 output lanes for
    lane-dense stores.  Weights are cast to bf16 (MXU operands); biases/LN params f32.
    """
    h1, h2 = hidden_layer_sizes
    out_pad = _round_up(output_dim, LANE)
    keys = jax.random.split(key, 6)

    def linear(kw, kb, fan_in, fan_out):
        bound = 1.0 / (fan_in ** 0.5)
        w = jax.random.uniform(kw, (fan_in, fan_out), jnp.float32, -bound, bound)
        b = jax.random.uniform(kb, (1, fan_out), jnp.float32, -bound, bound)
        return w, b

    w1, b1 = linear(keys[0], keys[1], input_dim, h1)
    w2, b2 = linear(keys[2], keys[3], h1, h2)
    w3, b3 = linear(keys[4], keys[5], h2, output_dim)

    def center_for_layernorm(w, b):
        # A LayerNorm immediately follows this Linear: subtracting each input row's
        # mean over the output columns makes (x @ w_c + b_c) == h - mean(h) exactly.
        return w - jnp.mean(w, axis=1, keepdims=True), b - jnp.mean(b)

    w1c, b1c = center_for_layernorm(w1, b1)
    w2c, b2c = center_for_layernorm(w2, b2)

    w3p = jnp.zeros((h2, out_pad), jnp.float32).at[:, :output_dim].set(w3)
    b3p = jnp.zeros((1, out_pad), jnp.float32).at[:, :output_dim].set(b3)

    return {
        "w1": w1c.astype(jnp.bfloat16), "b1": b1c,
        "g1": jnp.ones((1, h1), jnp.float32), "bt1": jnp.zeros((1, h1), jnp.float32),
        "w2": w2c.astype(jnp.bfloat16), "b2": b2c,
        "g2": jnp.ones((1, h2), jnp.float32), "bt2": jnp.zeros((1, h2), jnp.float32),
        "w3": w3p.astype(jnp.bfloat16), "b3": b3p,
        "out_dim": output_dim,
    }


def reference_forward(x, p):
    """Pure-JAX reference mirroring the kernel's bf16 operands / f32 accumulation,
    pre-centered LayerNorm and bf16 output rounding."""
    def mm(a, w):
        return jnp.dot(a.astype(jnp.bfloat16), w, preferred_element_type=jnp.float32)

    h = mm(x, p["w1"]) + p["b1"]
    h = _leaky_relu(_layernorm_centered(h, p["g1"], p["bt1"]))
    h = mm(h, p["w2"]) + p["b2"]
    h = _leaky_relu(_layernorm_centered(h, p["g2"], p["bt2"]))
    out = (mm(h, p["w3"]) + p["b3"]).astype(jnp.bfloat16)
    return out[:, :p["out_dim"]].astype(jnp.float32)


if __name__ == "__main__":
    key = jax.random.PRNGKey(0)
    k_x, k_p = jax.random.split(key)

    batch, input_dim, output_dim = 8, 32, 8
    hidden = (256, 128)  # module defaults

    x = jax.random.normal(k_x, (batch, input_dim), dtype=jnp.float32)
    params = init_params(k_p, input_dim, output_dim, hidden)

    out = deep_q_net_forward(x, params)
    out = jax.block_until_ready(out)

    ref = reference_forward(x, params)
    assert out.shape == (batch, output_dim)
    assert jnp.allclose(out, ref, atol=1e-2, rtol=1e-2), "mismatch vs reference"

    print("KERNEL_OK")
</pallas_src>

<mosaic_0001>
module attributes {stable_mosaic.version = 11 : i64} {
  func.func @dqnet_kernel(%arg0: i32, %arg1: memref<8x32xf32, #tpu.memory_space<vmem>>, %arg2: memref<32x256xbf16, #tpu.memory_space<vmem>>, %arg3: memref<1x256xf32, #tpu.memory_space<vmem>>, %arg4: memref<1x256xf32, #tpu.memory_space<vmem>>, %arg5: memref<1x256xf32, #tpu.memory_space<vmem>>, %arg6: memref<256x128xbf16, #tpu.memory_space<vmem>>, %arg7: memref<1x128xf32, #tpu.memory_space<vmem>>, %arg8: memref<1x128xf32, #tpu.memory_space<vmem>>, %arg9: memref<1x128xf32, #tpu.memory_space<vmem>>, %arg10: memref<128x128xbf16, #tpu.memory_space<vmem>>, %arg11: memref<1x128xf32, #tpu.memory_space<vmem>>, %arg12: memref<8x128xbf16, #tpu.memory_space<vmem>>) attributes {dimension_semantics = [#tpu.dimension_semantics<parallel>], iteration_bounds = array<i64: 1>, scalar_prefetch = 0 : i64, scratch_operands = 0 : i64, tpu.core_type = #tpu.core_type<tc>, window_params = [{transform_indices = @transform_0, window_bounds = array<i64: 8, 32>}, {pipeline_mode = #tpu.pipeline_mode<synchronous>, transform_indices = @transform_1, window_bounds = array<i64: 32, 256>}, {pipeline_mode = #tpu.pipeline_mode<synchronous>, transform_indices = @transform_2, window_bounds = array<i64: 1, 256>}, {pipeline_mode = #tpu.pipeline_mode<synchronous>, transform_indices = @transform_3, window_bounds = array<i64: 1, 256>}, {pipeline_mode = #tpu.pipeline_mode<synchronous>, transform_indices = @transform_4, window_bounds = array<i64: 1, 256>}, {pipeline_mode = #tpu.pipeline_mode<synchronous>, transform_indices = @transform_5, window_bounds = array<i64: 256, 128>}, {pipeline_mode = #tpu.pipeline_mode<synchronous>, transform_indices = @transform_6, window_bounds = array<i64: 1, 128>}, {pipeline_mode = #tpu.pipeline_mode<synchronous>, transform_indices = @transform_7, window_bounds = array<i64: 1, 128>}, {pipeline_mode = #tpu.pipeline_mode<synchronous>, transform_indices = @transform_8, window_bounds = array<i64: 1, 128>}, {pipeline_mode = #tpu.pipeline_mode<synchronous>, transform_indices = @transform_9, window_bounds = array<i64: 128, 128>}, {pipeline_mode = #tpu.pipeline_mode<synchronous>, transform_indices = @transform_10, window_bounds = array<i64: 1, 128>}, {transform_indices = @transform_11, window_bounds = array<i64: 8, 128>}]} {
    %c0 = arith.constant 0 : index
    %c0_0 = arith.constant 0 : index
    %0 = vector.load %arg1[%c0, %c0_0] : memref<8x32xf32, #tpu.memory_space<vmem>>, vector<8x32xf32>
    %1 = arith.truncf %0 : vector<8x32xf32> to vector<8x32xbf16>
    %c0_1 = arith.constant 0 : index
    %c0_2 = arith.constant 0 : index
    %2 = vector.load %arg2[%c0_1, %c0_2] : memref<32x256xbf16, #tpu.memory_space<vmem>>, vector<32x256xbf16>
    %cst = arith.constant dense<0.000000e+00> : vector<8x256xf32>
    %3 = tpu.matmul %1, %2, %cst {dimension_numbers = #tpu.dot_dimension_numbers<[1], [0], [0], [1], [0, 0, 1, 1], [], []>} : vector<8x32xbf16>, vector<32x256xbf16>, vector<8x256xf32> -> vector<8x256xf32>
    %c0_3 = arith.constant 0 : index
    %c0_4 = arith.constant 0 : index
    %4 = vector.load %arg3[%c0_3, %c0_4] : memref<1x256xf32, #tpu.memory_space<vmem>>, vector<1x256xf32>
    %5 = vector.broadcast %4 : vector<1x256xf32> to vector<8x256xf32>
    %6 = arith.addf %3, %5 : vector<8x256xf32>
    %c0_5 = arith.constant 0 : index
    %c0_6 = arith.constant 0 : index
    %7 = vector.load %arg4[%c0_5, %c0_6] : memref<1x256xf32, #tpu.memory_space<vmem>>, vector<1x256xf32>
    %c0_7 = arith.constant 0 : index
    %c0_8 = arith.constant 0 : index
    %8 = vector.load %arg5[%c0_7, %c0_8] : memref<1x256xf32, #tpu.memory_space<vmem>>, vector<1x256xf32>
    %9 = arith.mulf %6, %6 : vector<8x256xf32>
    %cst_9 = arith.constant dense<0.000000e+00> : vector<8xf32>
    %10 = vector.multi_reduction <add>, %9, %cst_9 [1] : vector<8x256xf32> to vector<8xf32>
    %11 = vector.shape_cast %10 : vector<8xf32> to vector<8x1xf32>
    %cst_10 = arith.constant 2.560000e+02 : f32
    %12 = vector.broadcast %cst_10 : f32 to vector<8x1xf32>
    %13 = arith.divf %11, %12 : vector<8x1xf32>
    %cst_11 = arith.constant 9.99999974E-6 : f32
    %14 = vector.broadcast %cst_11 : f32 to vector<8x1xf32>
    %15 = arith.addf %13, %14 : vector<8x1xf32>
    %16 = math.rsqrt %15 : vector<8x1xf32>
    %17 = vector.broadcast %16 : vector<8x1xf32> to vector<8x256xf32>
    %18 = vector.broadcast %7 : vector<1x256xf32> to vector<8x256xf32>
    %19 = arith.mulf %17, %18 : vector<8x256xf32>
    %20 = arith.mulf %6, %19 : vector<8x256xf32>
    %21 = vector.broadcast %8 : vector<1x256xf32> to vector<8x256xf32>
    %22 = arith.addf %20, %21 : vector<8x256xf32>
    %cst_12 = arith.constant 0.000000e+00 : f32
    %23 = vector.broadcast %cst_12 : f32 to vector<8x256xf32>
    %24 = arith.cmpf ogt, %22, %23 : vector<8x256xf32>
    %cst_13 = arith.constant 0.00999999977 : f32
    %25 = vector.broadcast %cst_13 : f32 to vector<8x256xf32>
    %26 = arith.mulf %25, %22 : vector<8x256xf32>
    %27 = arith.select %24, %22, %26 : vector<8x256xi1>, vector<8x256xf32>
    %28 = arith.truncf %27 : vector<8x256xf32> to vector<8x256xbf16>
    %c0_14 = arith.constant 0 : index
    %c0_15 = arith.constant 0 : index
    %29 = vector.load %arg6[%c0_14, %c0_15] : memref<256x128xbf16, #tpu.memory_space<vmem>>, vector<256x128xbf16>
    %cst_16 = arith.constant dense<0.000000e+00> : vector<8x128xf32>
    %30 = tpu.matmul %28, %29, %cst_16 {dimension_numbers = #tpu.dot_dimension_numbers<[1], [0], [0], [1], [0, 0, 1, 1], [], []>} : vector<8x256xbf16>, vector<256x128xbf16>, vector<8x128xf32> -> vector<8x128xf32>
    %c0_17 = arith.constant 0 : index
    %c0_18 = arith.constant 0 : index
    %31 = vector.load %arg7[%c0_17, %c0_18] : memref<1x128xf32, #tpu.memory_space<vmem>>, vector<1x128xf32>
    %32 = vector.broadcast %31 : vector<1x128xf32> to vector<8x128xf32>
    %33 = arith.addf %30, %32 : vector<8x128xf32>
    %c0_19 = arith.constant 0 : index
    %c0_20 = arith.constant 0 : index
    %34 = vector.load %arg8[%c0_19, %c0_20] : memref<1x128xf32, #tpu.memory_space<vmem>>, vector<1x128xf32>
    %c0_21 = arith.constant 0 : index
    %c0_22 = arith.constant 0 : index
    %35 = vector.load %arg9[%c0_21, %c0_22] : memref<1x128xf32, #tpu.memory_space<vmem>>, vector<1x128xf32>
    %36 = arith.mulf %33, %33 : vector<8x128xf32>
    %cst_23 = arith.constant dense<0.000000e+00> : vector<8xf32>
    %37 = vector.multi_reduction <add>, %36, %cst_23 [1] : vector<8x128xf32> to vector<8xf32>
    %38 = vector.shape_cast %37 : vector<8xf32> to vector<8x1xf32>
    %cst_24 = arith.constant 1.280000e+02 : f32
    %39 = vector.broadcast %cst_24 : f32 to vector<8x1xf32>
    %40 = arith.divf %38, %39 : vector<8x1xf32>
    %cst_25 = arith.constant 9.99999974E-6 : f32
    %41 = vector.broadcast %cst_25 : f32 to vector<8x1xf32>
    %42 = arith.addf %40, %41 : vector<8x1xf32>
    %43 = math.rsqrt %42 : vector<8x1xf32>
    %44 = vector.broadcast %43 : vector<8x1xf32> to vector<8x128xf32>
    %45 = vector.broadcast %34 : vector<1x128xf32> to vector<8x128xf32>
    %46 = arith.mulf %44, %45 : vector<8x128xf32>
    %47 = arith.mulf %33, %46 : vector<8x128xf32>
    %48 = vector.broadcast %35 : vector<1x128xf32> to vector<8x128xf32>
    %49 = arith.addf %47, %48 : vector<8x128xf32>
    %cst_26 = arith.constant 0.000000e+00 : f32
    %50 = vector.broadcast %cst_26 : f32 to vector<8x128xf32>
    %51 = arith.cmpf ogt, %49, %50 : vector<8x128xf32>
    %cst_27 = arith.constant 0.00999999977 : f32
    %52 = vector.broadcast %cst_27 : f32 to vector<8x128xf32>
    %53 = arith.mulf %52, %49 : vector<8x128xf32>
    %54 = arith.select %51, %49, %53 : vector<8x128xi1>, vector<8x128xf32>
    %55 = arith.truncf %54 : vector<8x128xf32> to vector<8x128xbf16>
    %c0_28 = arith.constant 0 : index
    %c0_29 = arith.constant 0 : index
    %56 = vector.load %arg10[%c0_28, %c0_29] : memref<128x128xbf16, #tpu.memory_space<vmem>>, vector<128x128xbf16>
    %cst_30 = arith.constant dense<0.000000e+00> : vector<8x128xf32>
    %57 = tpu.matmul %55, %56, %cst_30 {dimension_numbers = #tpu.dot_dimension_numbers<[1], [0], [0], [1], [0, 0, 1, 1], [], []>} : vector<8x128xbf16>, vector<128x128xbf16>, vector<8x128xf32> -> vector<8x128xf32>
    %c0_31 = arith.constant 0 : index
    %c0_32 = arith.constant 0 : index
    %58 = vector.load %arg11[%c0_31, %c0_32] : memref<1x128xf32, #tpu.memory_space<vmem>>, vector<1x128xf32>
    %59 = vector.broadcast %58 : vector<1x128xf32> to vector<8x128xf32>
    %60 = arith.addf %57, %59 : vector<8x128xf32>
    %61 = arith.truncf %60 : vector<8x128xf32> to vector<8x128xbf16>
    %c0_33 = arith.constant 0 : index
    %c0_34 = arith.constant 0 : index
    %62 = vector.load %arg12[%c0_33, %c0_34] : memref<8x128xbf16, #tpu.memory_space<vmem>>, vector<8x128xbf16>
    tpu.vector_store %arg12[%c0_33, %c0_34], %61 {strides = array<i32>} : memref<8x128xbf16, #tpu.memory_space<vmem>>, vector<8x128xbf16>,
    return
  }
  func.func @transform_0(%arg0: i32) -> (i32, i32) {
    %c0_i32 = arith.constant 0 : i32
    %c0_i32_0 = arith.constant 0 : i32
    return %arg0, %c0_i32 : i32, i32
  }
  func.func @transform_1(%arg0: i32) -> (i32, i32) {
    %c0_i32 = arith.constant 0 : i32
    %c0_i32_0 = arith.constant 0 : i32
    %c0_i32_1 = arith.constant 0 : i32
    return %c0_i32, %c0_i32_0 : i32, i32
  }
  func.func @transform_2(%arg0: i32) -> (i32, i32) {
    %c0_i32 = arith.constant 0 : i32
    %c0_i32_0 = arith.constant 0 : i32
    %c0_i32_1 = arith.constant 0 : i32
    return %c0_i32, %c0_i32_0 : i32, i32
  }
  func.func @transform_3(%arg0: i32) -> (i32, i32) {
    %c0_i32 = arith.constant 0 : i32
    %c0_i32_0 = arith.constant 0 : i32
    %c0_i32_1 = arith.constant 0 : i32
    return %c0_i32, %c0_i32_0 : i32, i32
  }
  func.func @transform_4(%arg0: i32) -> (i32, i32) {
    %c0_i32 = arith.constant 0 : i32
    %c0_i32_0 = arith.constant 0 : i32
    %c0_i32_1 = arith.constant 0 : i32
    return %c0_i32, %c0_i32_0 : i32, i32
  }
  func.func @transform_5(%arg0: i32) -> (i32, i32) {
    %c0_i32 = arith.constant 0 : i32
    %c0_i32_0 = arith.constant 0 : i32
    %c0_i32_1 = arith.constant 0 : i32
    return %c0_i32, %c0_i32_0 : i32, i32
  }
  func.func @transform_6(%arg0: i32) -> (i32, i32) {
    %c0_i32 = arith.constant 0 : i32
    %c0_i32_0 = arith.constant 0 : i32
    %c0_i32_1 = arith.constant 0 : i32
    return %c0_i32, %c0_i32_0 : i32, i32
  }
  func.func @transform_7(%arg0: i32) -> (i32, i32) {
    %c0_i32 = arith.constant 0 : i32
    %c0_i32_0 = arith.constant 0 : i32
    %c0_i32_1 = arith.constant 0 : i32
    return %c0_i32, %c0_i32_0 : i32, i32
  }
  func.func @transform_8(%arg0: i32) -> (i32, i32) {
    %c0_i32 = arith.constant 0 : i32
    %c0_i32_0 = arith.constant 0 : i32
    %c0_i32_1 = arith.constant 0 : i32
    return %c0_i32, %c0_i32_0 : i32, i32
  }
  func.func @transform_9(%arg0: i32) -> (i32, i32) {
    %c0_i32 = arith.constant 0 : i32
    %c0_i32_0 = arith.constant 0 : i32
    %c0_i32_1 = arith.constant 0 : i32
    return %c0_i32, %c0_i32_0 : i32, i32
  }
  func.func @transform_10(%arg0: i32) -> (i32, i32) {
    %c0_i32 = arith.constant 0 : i32
    %c0_i32_0 = arith.constant 0 : i32
    %c0_i32_1 = arith.constant 0 : i32
    return %c0_i32, %c0_i32_0 : i32, i32
  }
  func.func @transform_11(%arg0: i32) -> (i32, i32) {
    %c0_i32 = arith.constant 0 : i32
    %c0_i32_0 = arith.constant 0 : i32
    return %arg0, %c0_i32 : i32, i32
  }
}

</mosaic_0001>

<bundles_post_ra>
// kernel: tpu_custom_call.1
= control target key start
LH: loop header
LB: loop body
LE: loop exit
PB: predicated region body
PF: predicated region fallthrough
CT: control target
= control target key end

     0   :  { %16 = vsyncpa [#allocation3], 0  ;;  %s1002_s0 = inlined_call_operand.hbm [shape: f32[8,32], index: 0, kind: input, shape index: {}]   ;;  %s1003_s1 = inlined_call_operand.hbm [shape: bf16[32,256], index: 1, kind: input, shape index: {}]   ;;  %s1004_s2 = inlined_call_operand.hbm [shape: f32[1,256], index: 2, kind: input, shape index: {}]   ;;  %s1005_s3 = inlined_call_operand.vmem [shape: f32[1,256], index: 3, kind: input, shape index: {}]   ;;  %s1006_s4 = inlined_call_operand.hbm [shape: f32[1,256], index: 4, kind: input, shape index: {}]   ;;  %s1007_s5 = inlined_call_operand.hbm [shape: bf16[256,128], index: 5, kind: input, shape index: {}]   ;;  %s1008_s6 = inlined_call_operand.vmem [shape: f32[1,128], index: 6, kind: input, shape index: {}]   ;;  %s1009_s7 = inlined_call_operand.vmem [shape: f32[1,128], index: 7, kind: input, shape index: {}]   ;;  %s1010_s8 = inlined_call_operand.vmem [shape: f32[1,128], index: 8, kind: input, shape index: {}]   ;;  %s1011_s9 = inlined_call_operand.hbm [shape: bf16[128,128], index: 9, kind: input, shape index: {}]   ;;  %s1012_s10 = inlined_call_operand.vmem [shape: f32[1,128], index: 10, kind: input, shape index: {}]   ;;  %s1013_s11 = inlined_call_operand.hbm [shape: bf16[8,128], index: 11, kind: output, shape index: {}]  }
   0x1   :  { %17 = vsyncpa [#allocation6], 0 }
   0x2   :  { %18 = vsyncpa [#allocation9], 0 }
   0x3   :  { %19 = vsyncpa [#allocation12], 0  ;;  %s36_s19 = sshll.u32 %s1003_s1, 4  ;;  %s37_s19 = int_to_ptr.hbm [resolvable:$true] %s36_s19 }
   0x4   :  { %20 = vsyncpa [#allocation4], 0  ;;  %s883_s20 = smov [#allocation5]   ;;  %s63_s24 = sshll.u32 %s1006_s4, 4  ;;  %s64_s24 = int_to_ptr.hbm [resolvable:$true] %s63_s24 }
   0x5   :  { %s38_s21 = sshll.u32 %s883_s20, 4  ;;  %s884_s25 = smov 128   ;;  %s39_s21 = int_to_ptr.vmem [resolvable:$true] %s38_s21 }
   0x6   :  { %s885_s26 = smov 8   ;;  %s886_s27 = smov [#allocation8]  }
   0x7   :  { %44 = dma.hbm_to_vmem [thread:$0]  %s37_s19, 512, %s39_s21, [#allocation6], %s884_s25, %s884_s25, %s885_s26  }
   0x8   :  { %s65_s28 = sshll.u32 %s886_s27, 4  ;;  %s26_s12 = sshll.u32 %s1002_s0, 4  ;;  %s66_s28 = int_to_ptr.vmem [resolvable:$true] %s65_s28  ;;  %s27_s12 = int_to_ptr.hbm [resolvable:$true] %s26_s12 }
   0x9   :  { %68 = dma.hbm_to_vmem [thread:$0]  %s64_s24, 32, %s66_s28, [#allocation9]  }
   0xa   :  { %s50_s14 = sshll.u32 %s1004_s2, 4  ;;  %s887_s15 = smov [#allocation2]   ;;  %s51_s14 = int_to_ptr.hbm [resolvable:$true] %s50_s14 }
   0xb   :  { %s28_s16 = sshll.u32 %s887_s15, 4  ;;  %s888_s4 = smov [#allocation7]   ;;  %s29_s16 = int_to_ptr.vmem [resolvable:$true] %s28_s16 }
   0xc   :  { %31 = dma.hbm_to_vmem [thread:$0]  %s27_s12, 128, %s29_s16, [#allocation3]  }
   0xd   :  { %s52_s17 = sshll.u32 %s888_s4, 4  ;;  %s73_s20 = sshll.u32 %s1007_s5, 4  ;;  %s53_s17 = int_to_ptr.vmem [resolvable:$true] %s52_s17  ;;  %s74_s20 = int_to_ptr.hbm [resolvable:$true] %s73_s20 }
   0xe   :  { %55 = dma.hbm_to_vmem [thread:$0]  %s51_s14, 32, %s53_s17, [#allocation6]  }
   0xf   :  { %s889_s0 = smov [#allocation10]   ;;  %s92_s2 = sshll.u32 %s1011_s9, 4  ;;  %s93_s2 = int_to_ptr.hbm [resolvable:$true] %s92_s2 }
  0x10   :  { %s75_s21 = sshll.u32 %s889_s0, 4  ;;  %s890_s24 = smov 64   ;;  %s76_s21 = int_to_ptr.vmem [resolvable:$true] %s75_s21 }
  0x11   :  { %s891_s25 = smov 4   ;;  %s892_s26 = smov [#allocation11]  }
  0x12   :  { %81 = dma.hbm_to_vmem [thread:$0]  %s74_s20, 2048, %s76_s21, [#allocation9], %s890_s24, %s890_s24, %s891_s25  }
  0x13   :  { %s94_s27 = sshll.u32 %s892_s26, 4  ;;  %s95_s27 = int_to_ptr.vmem [resolvable:$true] %s94_s27 }
  0x14   :  { %100 = dma.hbm_to_vmem [thread:$0]  %s93_s2, 1024, %s95_s27, [#allocation12], %s890_s24, %s890_s24, %s891_s25  }
  0x15   :  { %873 = dma.done.wait [#allocation3], 128  }
  0x16   :  { %874 = vsyncadd [#allocation3], 4294967168 }
  0x17   :  { %875 = dma.done.wait [#allocation6], 544  }
  0x18   :  { %876 = vsyncadd [#allocation6], 4294966752 }
  0x19   :  { %877 = dma.done.wait [#allocation9], 2080  }
  0x1a   :  { %878 = vsyncadd [#allocation9], 4294965216 }
  0x1b   :  { %879 = dma.done.wait [#allocation12], 1024  }
  0x1c   :  { %880 = vsyncadd [#allocation12], 4294966272  ;;  %v548_v0 = vld [vmem:[#allocation5 + $0x10] sm:$0xf]  ;;  %v655_v1 = vld [vmem:[#allocation5 + $0x14] sm:$0xf0] }
  0x1d   :  { %v540_v2 = vld [vmem:[#allocation5] sm:$0xf]  ;;  %v549_v3 = vor.u32 %v655_v1, %v548_v0  ;;  %v653_v4 = vld [vmem:[#allocation5 + $0x4] sm:$0xf0]  ;;  %v654_v5 = vld [vmem:[#allocation5 + $0x14] sm:$0xf] }
  0x1e   :  { %v550_v6 = vld [vmem:[#allocation5 + $0x18] sm:$0xf0]  ;;  %v541_v7 = vor.u32 %v653_v4, %v540_v2  ;;  %v652_v10 = vld [vmem:[#allocation5 + $0x4] sm:$0xf]  ;;  %v542_v11 = vld [vmem:[#allocation5 + $0x8] sm:$0xf0] }
  0x1f   :  { %170 = vmatpush.bf16.msra.mxu1 %v549_v3  ;;  %v128_v8 = vld [vmem:[#allocation2] sm:$0xff]  ;;  %v553_v9 = vor.u32 %v654_v5, %v550_v6  ;;  %vm160_vm0 = vcmask 261120   ;;  %v545_v13 = vor.u32 %v652_v10, %v542_v11  ;;  %v134_v15 = vld [vmem:[#allocation7] sm:$0x3]  ;;  %v893_v28 = vmov 256.0   ;;  %v661_v31 = vld [vmem:[#allocation10 + $0x28] sm:$0xff] }
  0x20   :  { %v129_v12 = vpack.c.bf16 %v128_v8, %v128_v8  ;;  %v136_v17 = vperm.slane %v134_v15, 0  ;;  %v137_v18 = vperm.slane %v134_v15, 1  ;;  %v663_v26 = vld [vmem:[#allocation10 + $0x38] sm:$0xff]  ;;  %697 = vrcp.f32 %v893_v28  ;;  %v662_v29 = vld [vmem:[#allocation10 + $0x30] sm:$0xff]  ;;  %v669_v32 = vld [vmem:[#allocation10 + $0x68] sm:$0xff]  ;;  %s525_s4 = sshll.u32 %s1013_s11, 4  ;;  %s526_s4 = int_to_ptr.hbm [resolvable:$true] %s525_s4 }
  0x21   :  { %v671_v27 = vld [vmem:[#allocation10 + $0x78] sm:$0xff]  ;;  %372 = vmatpush.bf16.msra.mxu2 %v663_v26  ;;  %v670_v30 = vld [vmem:[#allocation10 + $0x70] sm:$0xff]  ;;  %v660_v34 = vld [vmem:[#allocation10 + $0x20] sm:$0xff] }
  0x22   :  { %385 = vmatpush.bf16.msra.mxu3 %v671_v27  ;;  %v668_v35 = vld [vmem:[#allocation10 + $0x60] sm:$0xff]  ;;  %v659_v37 = vld [vmem:[#allocation10 + $0x18] sm:$0xff]  ;;  %v658_v40 = vld [vmem:[#allocation10 + $0x10] sm:$0xff] }
  0x23   :  { %171 = vmatpush.bf16.msra.mxu1 %v541_v7  ;;  %v667_v38 = vld [vmem:[#allocation10 + $0x58] sm:$0xff]  ;;  %v666_v41 = vld [vmem:[#allocation10 + $0x50] sm:$0xff]  ;;  %v657_v43 = vld [vmem:[#allocation10 + $0x8] sm:$0xff] }
  0x24   :  { %v665_v44 = vld [vmem:[#allocation10 + $0x48] sm:$0xff]  ;;  %v656_v46 = vld [vmem:[#allocation10] sm:$0xff]  ;;  %v190_v55 = vld [vmem:[%s1005_s3] sm:$0x3] }
  0x25   :  { %373 = vmatpush.bf16.msra.mxu2 %v662_v29  ;;  %v664_v47 = vld [vmem:[#allocation10 + $0x40] sm:$0xff]  ;;  %v217_v58 = vperm.slane %v190_v55, 0  ;;  %v218_v59 = vperm.slane %v190_v55, 1  ;;  %v191_v61 = vld [vmem:[#allocation8] sm:$0x3] }
  0x26   :  { %554 = vmatmul.msk.bf16.vlgmr.msra.gmra.mxu1 %vm160_vm0, %v129_v12  ;;  %386 = vmatpush.bf16.msra.mxu3 %v670_v30  ;;  %v698_v33 = vpop.eup %697  ;;  %v226_v1 = vperm.slane %v191_v61, 0  ;;  %v227_v2 = vperm.slane %v191_v61, 1  ;;  %v676_v26 = vld [vmem:[#allocation11 + $0x20] sm:$0xff]  ;;  %v675_v28 = vld [vmem:[#allocation11 + $0x18] sm:$0xff]  ;;  %v674_v30 = vld [vmem:[#allocation11 + $0x10] sm:$0xff] }
  0x27   :  { %183 = vmatpush.bf16.msrb.mxu1 %v553_v9  ;;  %v198_v36 = vmul.f32 256.0, %v698_v33  ;;  %vm202_vm1 = vweird.f32 %v698_v33 }
  0x29   :  { %374 = vmatpush.bf16.msra.mxu2 %v661_v31  ;;  %v199_v39 = vsub.f32 1.0, %v198_v36 }
  0x2a   :  { %387 = vmatpush.bf16.msra.mxu3 %v669_v32  ;;  %v673_v32 = vld [vmem:[#allocation11 + $0x8] sm:$0xff] }
  0x2b   :  { %184 = vmatpush.bf16.msrb.mxu1 %v545_v13  ;;  %v200_v42 = vmul.f32 %v698_v33, %v199_v39  ;;  %v693_v13 = vld [vmem:[%s1008_s6] ss:$0 sm:$0xff] }
  0x2d   :  { %375 = vmatpush.bf16.msra.mxu2 %v660_v34  ;;  %v201_v45 = vadd.f32 %v698_v33, %v200_v42  ;;  %v672_v34 = vld [vmem:[#allocation11] sm:$0xff] }
  0x2e   :  { %388 = vmatpush.bf16.msra.mxu3 %v668_v35 }
  0x2f   :  { %v203_v48 = vsel %vm202_vm1, %v698_v33, %v201_v45 }
  0x31   :  { %376 = vmatpush.bf16.msra.mxu2 %v659_v37 }
  0x32   :  { %389 = vmatpush.bf16.msra.mxu3 %v667_v38 }
  0x35   :  { %377 = vmatpush.bf16.msra.mxu2 %v658_v40 }
  0x36   :  { %555 = vmatmul.msk.bf16.vlgmr.msrb.gmra.mxu1 %vm160_vm0, %v129_v12  ;;  %390 = vmatpush.bf16.msra.mxu3 %v666_v41 }
  0x39   :  { %378 = vmatpush.bf16.msra.mxu2 %v657_v43 }
  0x3a   :  { %391 = vmatpush.bf16.msra.mxu3 %v665_v44  ;;  %v694_v44 = vld [vmem:[%s1009_s7] ss:$0 sm:$0xff]  ;;  %s895_s7 = smov [#allocation13]  }
  0x3b   :  { %s523_s14 = sshll.u32 %s895_s7, 4  ;;  %s524_s14 = int_to_ptr.vmem [resolvable:$true] %s523_s14 }
  0x3d   :  { %379 = vmatpush.bf16.msra.mxu2 %v656_v46 }
  0x3e   :  { %392 = vmatpush.bf16.msra.mxu3 %v664_v47 }
  0xa3   :  { %v173_v14 = vpop.f32.mrf.mxu1 }
  0xa4   :  { %v974_v19 = vadd.f32 %v173_v14, %v136_v17 }
  0xa6   :  { %v192_v22 = vmul.f32 %v974_v19, %v974_v19 }
  0xab   :  { %v175_v16 = vpop.f32.mrf.mxu1 }
  0xb3   :  { %v186_v20 = vpop.f32.mrf.mxu1 }
  0xb4   :  { %v976_v21 = vadd.f32 %v186_v20, %v137_v18 }
  0xb6   :  { %v193_v23 = vmul.f32 %v976_v21, %v976_v21 }
  0xb8   :  { %v194_v24 = vadd.f32 %v193_v23, %v192_v22  ;;  %v894_v22 = vmov 128.0   ;;  %v678_v23 = vld [vmem:[#allocation11 + $0x30] sm:$0xff] }
  0xba   :  { %195 = vadd.xlane.f32.xlu0 %v194_v24  ;;  %v677_v24 = vld [vmem:[#allocation11 + $0x28] sm:$0xff] }
  0xbb   :  { %v188_v25 = vpop.f32.mrf.mxu1 }
 0x12d   :  { %v196_v49 = vpop.xlane.xlu0 %195 }
 0x12e   :  { %v204_v50 = vmul.f32 %v203_v48, %v196_v49  ;;  %v695_v48 = vld [vmem:[%s1010_s8] ss:$0 sm:$0xff] }
 0x130   :  { %v205_v51 = vadd.f32 1e-05, %v204_v50 }
 0x132   :  { %699 = vrsqrt.f32 %v205_v51  ;;  %vm212_vm3 = vweird.f32 %v205_v51 }
 0x133   :  { %701 = vrcp.f32 %v894_v22 }
 0x138   :  { %v700_v52 = vpop.eup %699 }
 0x139   :  { %v207_v53 = vmul.f32 %v700_v52, %v205_v51  ;;  %vm213_vm2 = vweird.f32 %v700_v52  ;;  %v702_v25 = vpop.eup %701 }
 0x13a   :  { %vm214_vm4 = vmor %vm212_vm3, %vm213_vm2  ;;  %v404_v27 = vmul.f32 128.0, %v702_v25  ;;  %vm408_vm7 = vweird.f32 %v702_v25 }
 0x13b   :  { %v208_v54 = vmul.f32 %v700_v52, %v207_v53 }
 0x13c   :  { %v405_v29 = vsub.f32 1.0, %v404_v27 }
 0x13d   :  { %v209_v56 = vmul.f32 0.5, %v208_v54  ;;  %v696_v54 = vld [vmem:[%s1012_s10] ss:$0 sm:$0xff] }
 0x13e   :  { %v406_v31 = vmul.f32 %v702_v25, %v405_v29 }
 0x13f   :  { %v210_v57 = vsub.f32 1.5, %v209_v56 }
 0x140   :  { %v407_v33 = vadd.f32 %v702_v25, %v406_v31 }
 0x141   :  { %v211_v60 = vmul.f32 %v700_v52, %v210_v57 }
 0x142   :  { %v409_v35 = vsel %vm408_vm7, %v702_v25, %v407_v33 }
 0x143   :  { %v215_v62 = vsel %vm214_vm4, %v700_v52, %v211_v60 }
 0x144   :  { %v221_v63 = vmul.f32 %v217_v58, %v215_v62  ;;  %v222_v0 = vmul.f32 %v218_v59, %v215_v62 }
 0x146   :  { %v223_v3 = vmul.f32 %v221_v63, %v974_v19  ;;  %v224_v4 = vmul.f32 %v222_v0, %v976_v21  ;;  %v679_v21 = vld [vmem:[#allocation11 + $0x38] sm:$0xff] }
 0x147   :  { %503 = vmatpush.bf16.msra.mxu0 %v679_v21 }
 0x148   :  { %v230_v5 = vadd.f32 %v226_v1, %v223_v3  ;;  %v231_v6 = vadd.f32 %v227_v2, %v224_v4 }
 0x14a   :  { %vm232_vm5 = vcmp.gt.f32.partialorder %v230_v5, 0.0  ;;  %v234_v7 = vmul.f32 0.01, %v230_v5  ;;  %vm233_vm6 = vcmp.gt.f32.partialorder %v231_v6, 0.0  ;;  %v235_v8 = vmul.f32 0.01, %v231_v6 }
 0x14b   :  { %504 = vmatpush.bf16.msra.mxu0 %v678_v23 }
 0x14c   :  { %v236_v9 = vsel %vm232_vm5, %v230_v5, %v234_v7  ;;  %v237_v10 = vsel %vm233_vm6, %v231_v6, %v235_v8 }
 0x14d   :  { %v238_v11 = vpack.c.bf16 %v236_v9, %v236_v9  ;;  %v239_v12 = vpack.c.bf16 %v237_v10, %v237_v10 }
 0x14f   :  { %380 = vmatmul.bf16.vlgmr.msra.gmra.mxu2 %v238_v11  ;;  %393 = vmatmul.bf16.vlgmr.msra.gmra.mxu3 %v239_v12 }
 0x150   :  { %505 = vmatpush.bf16.msra.mxu0 %v677_v24 }
 0x154   :  { %506 = vmatpush.bf16.msra.mxu0 %v676_v26 }
 0x158   :  { %507 = vmatpush.bf16.msra.mxu0 %v675_v28 }
 0x15c   :  { %508 = vmatpush.bf16.msra.mxu0 %v674_v30 }
 0x160   :  { %509 = vmatpush.bf16.msra.mxu0 %v673_v32 }
 0x164   :  { %510 = vmatpush.bf16.msra.mxu0 %v672_v34 }
 0x1d2   :  { %v381_v14 = vpop.f32.mrf.mxu2  ;;  %v394_v15 = vpop.f32.mrf.mxu3 }
 0x1d3   :  { %v382_v16 = vadd.f32 %v693_v13, %v381_v14 }
 0x1d5   :  { %v395_v17 = vadd.f32 %v394_v15, %v382_v16 }
 0x1d7   :  { %v400_v18 = vmul.f32 %v395_v17, %v395_v17 }
 0x1d9   :  { %401 = vadd.xlane.f32.xlu0 %v400_v18 }
 0x1da   :  { %v383_v19 = vpop.f32.mrf.mxu2  ;;  %v396_v20 = vpop.f32.mrf.mxu3 }
 0x24c   :  { %v402_v36 = vpop.xlane.xlu0 %401 }
 0x24d   :  { %v410_v37 = vmul.f32 %v409_v35, %v402_v36 }
 0x24f   :  { %v411_v38 = vadd.f32 1e-05, %v410_v37 }
 0x251   :  { %703 = vrsqrt.f32 %v411_v38  ;;  %vm418_vm9 = vweird.f32 %v411_v38 }
 0x257   :  { %v704_v39 = vpop.eup %703 }
 0x258   :  { %v413_v40 = vmul.f32 %v704_v39, %v411_v38  ;;  %vm419_vm8 = vweird.f32 %v704_v39 }
 0x259   :  { %vm420_vm10 = vmor %vm418_vm9, %vm419_vm8 }
 0x25a   :  { %v414_v41 = vmul.f32 %v704_v39, %v413_v40 }
 0x25c   :  { %v415_v42 = vmul.f32 0.5, %v414_v41 }
 0x25e   :  { %v416_v43 = vsub.f32 1.5, %v415_v42 }
 0x260   :  { %v417_v45 = vmul.f32 %v704_v39, %v416_v43 }
 0x262   :  { %v421_v46 = vsel %vm420_vm10, %v704_v39, %v417_v45 }
 0x263   :  { %v425_v47 = vmul.f32 %v694_v44, %v421_v46 }
 0x265   :  { %v426_v49 = vmul.f32 %v425_v47, %v395_v17 }
 0x267   :  { %v430_v50 = vadd.f32 %v695_v48, %v426_v49 }
 0x269   :  { %vm431_vm11 = vcmp.gt.f32.partialorder %v430_v50, 0.0  ;;  %v432_v51 = vmul.f32 0.01, %v430_v50 }
 0x26b   :  { %v433_v52 = vsel %vm431_vm11, %v430_v50, %v432_v51 }
 0x26c   :  { %v434_v53 = vpack.c.bf16 %v433_v52, %v433_v52 }
 0x26e   :  { %511 = vmatmul.bf16.vlgmr.msra.gmra.mxu0 %v434_v53 }
 0x2eb   :  { %v512_v55 = vpop.f32.mrf.mxu0 }
 0x2ec   :  { %v513_v56 = vadd.f32 %v696_v54, %v512_v55 }
 0x2ee   :  { %v516_v57 = vpack.c.bf16 %v513_v56, %v513_v56 }
 0x2f0   :  { %517 = vst [vmem:[#allocation13] sm:$0xf] %v516_v57 }
 0x2f1   :  { %528 = dma.vmem_to_hbm [thread:$0]  %s524_s14, 64, %s526_s4, [#allocation4]  }
 0x2f3   :  { %v514_v58 = vpop.f32.mrf.mxu0 }
 0x2f4   :  { %881 = dma.done.wait [#allocation4], 64  }
 0x2f5   :  { %882 = vsyncadd [#allocation4], 4294967232 }
 0x2f6   :  { %533 = vsyncpa [#allocation3], 1 }
 0x2f7   :  { %534 = vsyncpa [#allocation6], 1 }
 0x2f8   :  { %535 = vsyncpa [#allocation9], 1 }
 0x2f9   :  { %536 = vsyncpa [#allocation12], 1 }
 0x2fa   :  { %537 = vsyncpa [#allocation4], 1 }

</bundles_post_ra>
